<compile_context>
chip_gen: v7x
topology: tpu7x:2x2x1
jax: 0.10.0
libtpu: 0.0.40
codegen_flags: <defaults>
</compile_context>

<pallas_src>
import functools

import jax
import jax.numpy as jnp
from jax.experimental import pallas as pl
from jax.experimental.pallas import tpu as pltpu

EPS = 1e-5  # nn.InstanceNorm2d default


def convblock_kernel(x_ref, w_ref, b_ref, m_ref, o_ref, *, taps, wp, out_cols,
                     inv_count):
    """One sample: conv (shifted matmuls) + InstanceNorm2d + ReLU.

    x_ref: (1, C_in, Hp*Wp + kw-1)  bf16 reflect-padded, spatially flattened
    w_ref: (kh*kw, C_out, C_in)     bf16 per-tap weights
    b_ref: (C_out, 1)               f32 conv bias
    m_ref: (1, out_cols)            f32, 1.0 on valid columns, 0.0 on the
                                    Wp-Wo wrap-around garbage columns
    o_ref: (1, C_out, out_cols)     f32 output (spatial on the lane dim)
    """
    c_out = o_ref.shape[1]

    # --- Convolution: sum over kh*kw taps of (C_out, C_in) @ (C_in, L). ---
    acc = jnp.zeros((c_out, out_cols), jnp.float32)
    for t, (ki, kj) in enumerate(taps):
        off = ki * wp + kj                           # static lane offset
        xs = x_ref[0, :, pl.ds(off, out_cols)]       # (C_in, L) bf16
        acc = acc + jnp.dot(w_ref[t], xs,
                            preferred_element_type=jnp.float32)

    y = acc + b_ref[...]                             # bias broadcast (C_out, 1)

    # --- InstanceNorm2d (biased variance, eps=1e-5, no affine), f32. ---
    mask = m_ref[...]                                # (1, L)
    mean = jnp.sum(y * mask, axis=-1, keepdims=True) * inv_count
    centered = y - mean                              # reused below
    var = jnp.sum(centered * centered * mask, axis=-1,
                  keepdims=True) * inv_count
    y = centered * jax.lax.rsqrt(var + EPS)          # rsqrt -> EUP

    # --- ReLU + lane-dense store. ---
    o_ref[0] = jnp.maximum(y, 0.0).astype(o_ref.dtype)


def conv_block(x, weight, bias, *, stride=1, padding=1,
               compute_dtype=jnp.bfloat16):
    """ConvBlock forward. x: (N, C_in, H, W) NCHW; returns (N, C_out, Ho, Wo)."""
    assert stride == 1, "Pallas ConvBlock kernel currently supports stride=1"
    C_out, C_in, kh, kw = weight.shape
    N, _, H, W = x.shape
    pad = padding

    # Reflect pad (halo only -- no im2col blow-up) and flatten the spatial dims.
    xp = jnp.pad(x, ((0, 0), (0, 0), (pad, pad), (pad, pad)), mode="reflect")
    Hp, Wp = H + 2 * pad, W + 2 * pad
    Ho, Wo = Hp - kh + 1, Wp - kw + 1
    L = Ho * Wp                   # columns computed per sample; Wp-Wo of every
                                  # row are wrap-around garbage (masked/sliced)
    x_flat = xp.reshape(N, C_in, Hp * Wp)
    # kw-1 trailing zeros so every tap's length-L lane slice stays in bounds.
    x_flat = jnp.pad(x_flat, ((0, 0), (0, 0), (0, kw - 1)))
    x_flat = x_flat.astype(compute_dtype)
    Lx = Hp * Wp + kw - 1

    # Per-tap weights: (kh*kw, C_out, C_in), bf16 for the MXU.
    w_taps = jnp.transpose(weight, (2, 3, 0, 1)).reshape(kh * kw, C_out, C_in)
    w_taps = w_taps.astype(compute_dtype)
    b2d = bias.reshape(C_out, 1).astype(jnp.float32)

    # Valid-column mask: flat position p = h*Wp + w is valid iff w < Wo.
    row_mask = jnp.concatenate(
        [jnp.ones((Wo,), jnp.float32), jnp.zeros((Wp - Wo,), jnp.float32)])
    mask = jnp.tile(row_mask, Ho).reshape(1, L)

    taps = tuple((ki, kj) for ki in range(kh) for kj in range(kw))
    kernel = functools.partial(convblock_kernel, taps=taps, wp=Wp,
                               out_cols=L, inv_count=1.0 / (Ho * Wo))

    out = pl.pallas_call(
        kernel,
        out_shape=jax.ShapeDtypeStruct((N, C_out, L), jnp.float32),
        grid_spec=pltpu.PrefetchScalarGridSpec(
            num_scalar_prefetch=0,
            grid=(N,),
            in_specs=[
                pl.BlockSpec((1, C_in, Lx), lambda n: (n, 0, 0)),
                pl.BlockSpec((kh * kw, C_out, C_in), lambda n: (0, 0, 0)),
                pl.BlockSpec((C_out, 1), lambda n: (0, 0)),
                pl.BlockSpec((1, L), lambda n: (0, 0)),
            ],
            out_specs=pl.BlockSpec((1, C_out, L), lambda n: (n, 0, 0)),
        ),
        compiler_params=pltpu.CompilerParams(
            dimension_semantics=("parallel",),
            vmem_limit_bytes=32 * 1024 * 1024,
        ),
    )(x_flat, w_taps, b2d, mask)

    # (N, C_out, Ho*Wp) -> drop garbage columns -> (N, C_out, Ho, Wo).
    # Cheap slice; no full NCHW transpose round trip.
    return out.reshape(N, C_out, Ho, Wp)[:, :, :, :Wo]


def _reference(x, weight, bias, pad):
    """Pure-JAX reference matching the PyTorch ConvBlock forward."""
    xp = jnp.pad(x, ((0, 0), (0, 0), (pad, pad), (pad, pad)), mode="reflect")
    y = jax.lax.conv_general_dilated(
        xp, weight, window_strides=(1, 1), padding="VALID",
        dimension_numbers=("NCHW", "OIHW", "NCHW"))
    y = y + bias.reshape(1, -1, 1, 1)
    mean = jnp.mean(y, axis=(2, 3), keepdims=True)
    var = jnp.mean((y - mean) ** 2, axis=(2, 3), keepdims=True)
    return jnp.maximum((y - mean) * jax.lax.rsqrt(var + EPS), 0.0)


if __name__ == "__main__":
    key = jax.random.PRNGKey(0)
    k_x, k_w, k_b = jax.random.split(key, 3)

    N, C_in, H, W = 2, 4, 16, 16
    C_out, ksize = 8, 3

    x = jax.random.normal(k_x, (N, C_in, H, W), dtype=jnp.float32)
    fan_in = C_in * ksize * ksize
    bound = 1.0 / (fan_in ** 0.5)
    weight = jax.random.uniform(k_w, (C_out, C_in, ksize, ksize),
                                minval=-bound, maxval=bound, dtype=jnp.float32)
    bias = jax.random.uniform(k_b, (C_out,), minval=-bound, maxval=bound,
                              dtype=jnp.float32)

    y = conv_block(x, weight, bias, stride=1, padding=1)
    y = jax.block_until_ready(y)
    assert y.shape == (N, C_out, H, W)
    assert bool(jnp.all(jnp.isfinite(y)))
    assert bool(jnp.all(y >= 0.0))  # ReLU output

    # Cross-check vs XLA reference (bf16 MXU inputs -> loose tolerance).
    y_ref = jax.block_until_ready(_reference(x, weight, bias, pad=1))
    max_err = float(jnp.max(jnp.abs(y - y_ref)))
    assert max_err < 5e-2, f"max abs err vs reference: {max_err}"

    print("KERNEL_OK")
</pallas_src>

<mosaic_0001>
module attributes {stable_mosaic.version = 11 : i64} {
  func.func @convblock_kernel(%arg0: i32, %arg1: memref<1x4x326xbf16, #tpu.memory_space<vmem>>, %arg2: memref<9x8x4xbf16, #tpu.memory_space<vmem>>, %arg3: memref<8x1xf32, #tpu.memory_space<vmem>>, %arg4: memref<1x288xf32, #tpu.memory_space<vmem>>, %arg5: memref<1x8x288xf32, #tpu.memory_space<vmem>>) attributes {dimension_semantics = [#tpu.dimension_semantics<parallel>], iteration_bounds = array<i64: 2>, scalar_prefetch = 0 : i64, scratch_operands = 0 : i64, tpu.core_type = #tpu.core_type<tc>, window_params = [{transform_indices = @transform_0, window_bounds = array<i64: 1, 4, 326>}, {pipeline_mode = #tpu.pipeline_mode<synchronous>, transform_indices = @transform_1, window_bounds = array<i64: 9, 8, 4>}, {pipeline_mode = #tpu.pipeline_mode<synchronous>, transform_indices = @transform_2, window_bounds = array<i64: 8, 1>}, {pipeline_mode = #tpu.pipeline_mode<synchronous>, transform_indices = @transform_3, window_bounds = array<i64: 1, 288>}, {transform_indices = @transform_4, window_bounds = array<i64: 1, 8, 288>}]} {
    %cst = arith.constant 0.000000e+00 : f32
    %0 = vector.broadcast %cst : f32 to vector<8x288xf32>
    %c0 = arith.constant 0 : index
    %c0_0 = arith.constant 0 : index
    %c0_1 = arith.constant 0 : index
    %1 = vector.load %arg1[%c0, %c0_0, %c0_1] : memref<1x4x326xbf16, #tpu.memory_space<vmem>>, vector<1x4x288xbf16>
    %2 = vector.shape_cast %1 : vector<1x4x288xbf16> to vector<4x288xbf16>
    %c0_2 = arith.constant 0 : index
    %c0_3 = arith.constant 0 : index
    %c0_4 = arith.constant 0 : index
    %3 = vector.load %arg2[%c0_2, %c0_3, %c0_4] : memref<9x8x4xbf16, #tpu.memory_space<vmem>>, vector<1x8x4xbf16>
    %4 = vector.shape_cast %3 : vector<1x8x4xbf16> to vector<8x4xbf16>
    %cst_5 = arith.constant dense<0.000000e+00> : vector<8x288xf32>
    %5 = tpu.matmul %4, %2, %cst_5 {dimension_numbers = #tpu.dot_dimension_numbers<[1], [0], [0], [1], [0, 0, 1, 1], [], []>} : vector<8x4xbf16>, vector<4x288xbf16>, vector<8x288xf32> -> vector<8x288xf32>
    %6 = arith.addf %0, %5 : vector<8x288xf32>
    %c0_6 = arith.constant 0 : index
    %c0_7 = arith.constant 0 : index
    %c1 = arith.constant 1 : index
    %7 = vector.load %arg1[%c0_6, %c0_7, %c1] : memref<1x4x326xbf16, #tpu.memory_space<vmem>>, vector<1x4x288xbf16>
    %8 = vector.shape_cast %7 : vector<1x4x288xbf16> to vector<4x288xbf16>
    %c1_8 = arith.constant 1 : index
    %c0_9 = arith.constant 0 : index
    %c0_10 = arith.constant 0 : index
    %9 = vector.load %arg2[%c1_8, %c0_9, %c0_10] : memref<9x8x4xbf16, #tpu.memory_space<vmem>>, vector<1x8x4xbf16>
    %10 = vector.shape_cast %9 : vector<1x8x4xbf16> to vector<8x4xbf16>
    %cst_11 = arith.constant dense<0.000000e+00> : vector<8x288xf32>
    %11 = tpu.matmul %10, %8, %cst_11 {dimension_numbers = #tpu.dot_dimension_numbers<[1], [0], [0], [1], [0, 0, 1, 1], [], []>} : vector<8x4xbf16>, vector<4x288xbf16>, vector<8x288xf32> -> vector<8x288xf32>
    %12 = arith.addf %6, %11 : vector<8x288xf32>
    %c0_12 = arith.constant 0 : index
    %c0_13 = arith.constant 0 : index
    %c2 = arith.constant 2 : index
    %13 = vector.load %arg1[%c0_12, %c0_13, %c2] : memref<1x4x326xbf16, #tpu.memory_space<vmem>>, vector<1x4x288xbf16>
    %14 = vector.shape_cast %13 : vector<1x4x288xbf16> to vector<4x288xbf16>
    %c2_14 = arith.constant 2 : index
    %c0_15 = arith.constant 0 : index
    %c0_16 = arith.constant 0 : index
    %15 = vector.load %arg2[%c2_14, %c0_15, %c0_16] : memref<9x8x4xbf16, #tpu.memory_space<vmem>>, vector<1x8x4xbf16>
    %16 = vector.shape_cast %15 : vector<1x8x4xbf16> to vector<8x4xbf16>
    %cst_17 = arith.constant dense<0.000000e+00> : vector<8x288xf32>
    %17 = tpu.matmul %16, %14, %cst_17 {dimension_numbers = #tpu.dot_dimension_numbers<[1], [0], [0], [1], [0, 0, 1, 1], [], []>} : vector<8x4xbf16>, vector<4x288xbf16>, vector<8x288xf32> -> vector<8x288xf32>
    %18 = arith.addf %12, %17 : vector<8x288xf32>
    %c0_18 = arith.constant 0 : index
    %c0_19 = arith.constant 0 : index
    %c18 = arith.constant 18 : index
    %19 = vector.load %arg1[%c0_18, %c0_19, %c18] : memref<1x4x326xbf16, #tpu.memory_space<vmem>>, vector<1x4x288xbf16>
    %20 = vector.shape_cast %19 : vector<1x4x288xbf16> to vector<4x288xbf16>
    %c3 = arith.constant 3 : index
    %c0_20 = arith.constant 0 : index
    %c0_21 = arith.constant 0 : index
    %21 = vector.load %arg2[%c3, %c0_20, %c0_21] : memref<9x8x4xbf16, #tpu.memory_space<vmem>>, vector<1x8x4xbf16>
    %22 = vector.shape_cast %21 : vector<1x8x4xbf16> to vector<8x4xbf16>
    %cst_22 = arith.constant dense<0.000000e+00> : vector<8x288xf32>
    %23 = tpu.matmul %22, %20, %cst_22 {dimension_numbers = #tpu.dot_dimension_numbers<[1], [0], [0], [1], [0, 0, 1, 1], [], []>} : vector<8x4xbf16>, vector<4x288xbf16>, vector<8x288xf32> -> vector<8x288xf32>
    %24 = arith.addf %18, %23 : vector<8x288xf32>
    %c0_23 = arith.constant 0 : index
    %c0_24 = arith.constant 0 : index
    %c19 = arith.constant 19 : index
    %25 = vector.load %arg1[%c0_23, %c0_24, %c19] : memref<1x4x326xbf16, #tpu.memory_space<vmem>>, vector<1x4x288xbf16>
    %26 = vector.shape_cast %25 : vector<1x4x288xbf16> to vector<4x288xbf16>
    %c4 = arith.constant 4 : index
    %c0_25 = arith.constant 0 : index
    %c0_26 = arith.constant 0 : index
    %27 = vector.load %arg2[%c4, %c0_25, %c0_26] : memref<9x8x4xbf16, #tpu.memory_space<vmem>>, vector<1x8x4xbf16>
    %28 = vector.shape_cast %27 : vector<1x8x4xbf16> to vector<8x4xbf16>
    %cst_27 = arith.constant dense<0.000000e+00> : vector<8x288xf32>
    %29 = tpu.matmul %28, %26, %cst_27 {dimension_numbers = #tpu.dot_dimension_numbers<[1], [0], [0], [1], [0, 0, 1, 1], [], []>} : vector<8x4xbf16>, vector<4x288xbf16>, vector<8x288xf32> -> vector<8x288xf32>
    %30 = arith.addf %24, %29 : vector<8x288xf32>
    %c0_28 = arith.constant 0 : index
    %c0_29 = arith.constant 0 : index
    %c20 = arith.constant 20 : index
    %31 = vector.load %arg1[%c0_28, %c0_29, %c20] : memref<1x4x326xbf16, #tpu.memory_space<vmem>>, vector<1x4x288xbf16>
    %32 = vector.shape_cast %31 : vector<1x4x288xbf16> to vector<4x288xbf16>
    %c5 = arith.constant 5 : index
    %c0_30 = arith.constant 0 : index
    %c0_31 = arith.constant 0 : index
    %33 = vector.load %arg2[%c5, %c0_30, %c0_31] : memref<9x8x4xbf16, #tpu.memory_space<vmem>>, vector<1x8x4xbf16>
    %34 = vector.shape_cast %33 : vector<1x8x4xbf16> to vector<8x4xbf16>
    %cst_32 = arith.constant dense<0.000000e+00> : vector<8x288xf32>
    %35 = tpu.matmul %34, %32, %cst_32 {dimension_numbers = #tpu.dot_dimension_numbers<[1], [0], [0], [1], [0, 0, 1, 1], [], []>} : vector<8x4xbf16>, vector<4x288xbf16>, vector<8x288xf32> -> vector<8x288xf32>
    %36 = arith.addf %30, %35 : vector<8x288xf32>
    %c0_33 = arith.constant 0 : index
    %c0_34 = arith.constant 0 : index
    %c36 = arith.constant 36 : index
    %37 = vector.load %arg1[%c0_33, %c0_34, %c36] : memref<1x4x326xbf16, #tpu.memory_space<vmem>>, vector<1x4x288xbf16>
    %38 = vector.shape_cast %37 : vector<1x4x288xbf16> to vector<4x288xbf16>
    %c6 = arith.constant 6 : index
    %c0_35 = arith.constant 0 : index
    %c0_36 = arith.constant 0 : index
    %39 = vector.load %arg2[%c6, %c0_35, %c0_36] : memref<9x8x4xbf16, #tpu.memory_space<vmem>>, vector<1x8x4xbf16>
    %40 = vector.shape_cast %39 : vector<1x8x4xbf16> to vector<8x4xbf16>
    %cst_37 = arith.constant dense<0.000000e+00> : vector<8x288xf32>
    %41 = tpu.matmul %40, %38, %cst_37 {dimension_numbers = #tpu.dot_dimension_numbers<[1], [0], [0], [1], [0, 0, 1, 1], [], []>} : vector<8x4xbf16>, vector<4x288xbf16>, vector<8x288xf32> -> vector<8x288xf32>
    %42 = arith.addf %36, %41 : vector<8x288xf32>
    %c0_38 = arith.constant 0 : index
    %c0_39 = arith.constant 0 : index
    %c37 = arith.constant 37 : index
    %43 = vector.load %arg1[%c0_38, %c0_39, %c37] : memref<1x4x326xbf16, #tpu.memory_space<vmem>>, vector<1x4x288xbf16>
    %44 = vector.shape_cast %43 : vector<1x4x288xbf16> to vector<4x288xbf16>
    %c7 = arith.constant 7 : index
    %c0_40 = arith.constant 0 : index
    %c0_41 = arith.constant 0 : index
    %45 = vector.load %arg2[%c7, %c0_40, %c0_41] : memref<9x8x4xbf16, #tpu.memory_space<vmem>>, vector<1x8x4xbf16>
    %46 = vector.shape_cast %45 : vector<1x8x4xbf16> to vector<8x4xbf16>
    %cst_42 = arith.constant dense<0.000000e+00> : vector<8x288xf32>
    %47 = tpu.matmul %46, %44, %cst_42 {dimension_numbers = #tpu.dot_dimension_numbers<[1], [0], [0], [1], [0, 0, 1, 1], [], []>} : vector<8x4xbf16>, vector<4x288xbf16>, vector<8x288xf32> -> vector<8x288xf32>
    %48 = arith.addf %42, %47 : vector<8x288xf32>
    %c0_43 = arith.constant 0 : index
    %c0_44 = arith.constant 0 : index
    %c38 = arith.constant 38 : index
    %49 = vector.load %arg1[%c0_43, %c0_44, %c38] : memref<1x4x326xbf16, #tpu.memory_space<vmem>>, vector<1x4x288xbf16>
    %50 = vector.shape_cast %49 : vector<1x4x288xbf16> to vector<4x288xbf16>
    %c8 = arith.constant 8 : index
    %c0_45 = arith.constant 0 : index
    %c0_46 = arith.constant 0 : index
    %51 = vector.load %arg2[%c8, %c0_45, %c0_46] : memref<9x8x4xbf16, #tpu.memory_space<vmem>>, vector<1x8x4xbf16>
    %52 = vector.shape_cast %51 : vector<1x8x4xbf16> to vector<8x4xbf16>
    %cst_47 = arith.constant dense<0.000000e+00> : vector<8x288xf32>
    %53 = tpu.matmul %52, %50, %cst_47 {dimension_numbers = #tpu.dot_dimension_numbers<[1], [0], [0], [1], [0, 0, 1, 1], [], []>} : vector<8x4xbf16>, vector<4x288xbf16>, vector<8x288xf32> -> vector<8x288xf32>
    %54 = arith.addf %48, %53 : vector<8x288xf32>
    %c0_48 = arith.constant 0 : index
    %c0_49 = arith.constant 0 : index
    %55 = vector.load %arg3[%c0_48, %c0_49] : memref<8x1xf32, #tpu.memory_space<vmem>>, vector<8x1xf32>
    %56 = vector.broadcast %55 : vector<8x1xf32> to vector<8x288xf32>
    %57 = arith.addf %54, %56 : vector<8x288xf32>
    %c0_50 = arith.constant 0 : index
    %c0_51 = arith.constant 0 : index
    %58 = vector.load %arg4[%c0_50, %c0_51] : memref<1x288xf32, #tpu.memory_space<vmem>>, vector<1x288xf32>
    %59 = vector.broadcast %58 : vector<1x288xf32> to vector<8x288xf32>
    %60 = arith.mulf %57, %59 : vector<8x288xf32>
    %cst_52 = arith.constant dense<0.000000e+00> : vector<8xf32>
    %61 = vector.multi_reduction <add>, %60, %cst_52 [1] : vector<8x288xf32> to vector<8xf32>
    %62 = vector.shape_cast %61 : vector<8xf32> to vector<8x1xf32>
    %cst_53 = arith.constant 3.906250e-03 : f32
    %63 = vector.broadcast %cst_53 : f32 to vector<8x1xf32>
    %64 = arith.mulf %62, %63 : vector<8x1xf32>
    %65 = vector.broadcast %64 : vector<8x1xf32> to vector<8x288xf32>
    %66 = arith.subf %57, %65 : vector<8x288xf32>
    %67 = arith.mulf %66, %66 : vector<8x288xf32>
    %68 = vector.broadcast %58 : vector<1x288xf32> to vector<8x288xf32>
    %69 = arith.mulf %67, %68 : vector<8x288xf32>
    %cst_54 = arith.constant dense<0.000000e+00> : vector<8xf32>
    %70 = vector.multi_reduction <add>, %69, %cst_54 [1] : vector<8x288xf32> to vector<8xf32>
    %71 = vector.shape_cast %70 : vector<8xf32> to vector<8x1xf32>
    %cst_55 = arith.constant 3.906250e-03 : f32
    %72 = vector.broadcast %cst_55 : f32 to vector<8x1xf32>
    %73 = arith.mulf %71, %72 : vector<8x1xf32>
    %cst_56 = arith.constant 9.99999974E-6 : f32
    %74 = vector.broadcast %cst_56 : f32 to vector<8x1xf32>
    %75 = arith.addf %73, %74 : vector<8x1xf32>
    %76 = math.rsqrt %75 : vector<8x1xf32>
    %77 = vector.broadcast %76 : vector<8x1xf32> to vector<8x288xf32>
    %78 = arith.mulf %66, %77 : vector<8x288xf32>
    %cst_57 = arith.constant 0.000000e+00 : f32
    %79 = vector.broadcast %cst_57 : f32 to vector<8x288xf32>
    %80 = arith.maximumf %78, %79 : vector<8x288xf32>
    %c0_58 = arith.constant 0 : index
    %c0_59 = arith.constant 0 : index
    %c0_60 = arith.constant 0 : index
    %81 = vector.load %arg5[%c0_58, %c0_59, %c0_60] : memref<1x8x288xf32, #tpu.memory_space<vmem>>, vector<1x8x288xf32>
    %82 = vector.shape_cast %81 : vector<1x8x288xf32> to vector<8x288xf32>
    %83 = vector.shape_cast %80 : vector<8x288xf32> to vector<1x8x288xf32>
    tpu.vector_store %arg5[%c0_58, %c0_59, %c0_60], %83 {strides = array<i32>} : memref<1x8x288xf32, #tpu.memory_space<vmem>>, vector<1x8x288xf32>,
    return
  }
  func.func @transform_0(%arg0: i32) -> (i32, i32, i32) {
    %c0_i32 = arith.constant 0 : i32
    %c0_i32_0 = arith.constant 0 : i32
    %c0_i32_1 = arith.constant 0 : i32
    return %arg0, %c0_i32, %c0_i32_0 : i32, i32, i32
  }
  func.func @transform_1(%arg0: i32) -> (i32, i32, i32) {
    %c0_i32 = arith.constant 0 : i32
    %c0_i32_0 = arith.constant 0 : i32
    %c0_i32_1 = arith.constant 0 : i32
    %c0_i32_2 = arith.constant 0 : i32
    return %c0_i32, %c0_i32_0, %c0_i32_1 : i32, i32, i32
  }
  func.func @transform_2(%arg0: i32) -> (i32, i32) {
    %c0_i32 = arith.constant 0 : i32
    %c0_i32_0 = arith.constant 0 : i32
    %c0_i32_1 = arith.constant 0 : i32
    return %c0_i32, %c0_i32_0 : i32, i32
  }
  func.func @transform_3(%arg0: i32) -> (i32, i32) {
    %c0_i32 = arith.constant 0 : i32
    %c0_i32_0 = arith.constant 0 : i32
    %c0_i32_1 = arith.constant 0 : i32
    return %c0_i32, %c0_i32_0 : i32, i32
  }
  func.func @transform_4(%arg0: i32) -> (i32, i32, i32) {
    %c0_i32 = arith.constant 0 : i32
    %c0_i32_0 = arith.constant 0 : i32
    %c0_i32_1 = arith.constant 0 : i32
    return %arg0, %c0_i32, %c0_i32_0 : i32, i32, i32
  }
}

</mosaic_0001>

<bundles_post_ra>
// kernel: tpu_custom_call.1
= control target key start
LH: loop header
LB: loop body
LE: loop exit
PB: predicated region body
PF: predicated region fallthrough
CT: control target
= control target key end

     0   :  { %9 = vsyncpa [#allocation3], 0  ;;  %s1976_s0 = inlined_call_operand.vmem [shape: bf16[2,4,326], index: 0, kind: input, shape index: {}]   ;;  %s1977_s1 = inlined_call_operand.vmem [shape: bf16[9,8,4], index: 1, kind: input, shape index: {}]   ;;  %s1978_s2 = inlined_call_operand.vmem [shape: f32[8,1], index: 2, kind: input, shape index: {}]   ;;  %s1979_s3 = inlined_call_operand.vmem [shape: f32[1,288], index: 3, kind: input, shape index: {}]   ;;  %s1980_s4 = inlined_call_operand.hbm [shape: f32[2,8,288], index: 4, kind: output, shape index: {}]  }
   0x1   :  { %11 = vsyncpa [#allocation3 + $0x1], 0  ;;  %s1708_s15 = smov 0   ;;  %s1710_s16 = smov 0  }
   0x2   :  { %s1712_s17 = smov 0   ;;  %s1714_s18 = smov 0  }
   0x3 LB: > { %s1729_s19 = sadd.s32 4294967295, %s1668_s18   ;;  %s1426_s20 = sadd.s32 4294967294, %s1668_s18   ;;  %s1668_s18 = sphi %s1714_s18, %s1986_s18   ;;  %s1664_s17 = sphi %s1712_s17, %s1985_s17   ;;  %s1660_s16 = sphi %s1710_s16, %s1984_s16   ;;  %s1656_s15 = sphi %s1708_s15, %s1983_s15  }
   0x4   : > { %s1733_s21 = sadd.s32 1, %s1668_s18   ;;  %s113_s22 = sadd.s32 1, %s1664_s17 }
   0x5   : > { %s110_s23 = ssub.s32 %s1668_s18, %s1733_s21  ;;  %p123_p0 = scmp.ne.s32.totalorder %s1664_s17, %s1660_s16 }
   0x6   : > { %p111_p1 = scmp.eq.s32.totalorder %s110_s23, 0  ;;  %p124_p2 = scmp.eq.s32.totalorder %s1729_s19, 1 }
   0x7   : > { %p129_p3 = scmp.ne.s32.totalorder %s1660_s16, %s1656_s15  ;;  %p130_p4 = scmp.eq.s32.totalorder %s1426_s20, 1 }
   0x8   : > { %s1744_s24 = scalar_select %p111_p1, %s1664_s17, %s113_s22  }
   0x9   : > { %p1746_p5 = por %p124_p2, %p123_p0  ;;  %p1750_p6 = por %p130_p4, %p129_p3 }
   0xa   : > { %p1429_p7 = scmp.ge.s32.totalorder %s1668_s18, 1  ;;  %p165_p8 = scmp.lt.s32.totalorder %s1668_s18, 3 }
   0xc   : > { %p166_p9 = pnand %p1429_p7, %p165_p8 }
   0xd   : > { %p191_p10 = scmp.lt.s32.totalorder (!%p166_p9), %s1729_s19, 1  ;;  %v206_v0 = vlaneseq (!%p166_p9)  ;;  %v1670_v1 = vmov (!%p166_p9), 1983009808   ;;  %v1671_v3 = vmov (!%p166_p9), 0.0   ;;  %vm1672_vm0 = vmmov (!%p166_p9), 0   ;;  %s1674_s6 = smov (!%p166_p9), 127  }
   0xe   : > { %169 = sbr.rel (%p166_p9) target bundleno = 770 (0x302), region = 36  ;;  %v204_v2 = vunpack.c.l.s4 (!%p166_p9), %v1670_v1  ;;  %1487 = vmatprep.subr.bf16.mxu1 (!%p166_p9), %v1671_v3  ;;  %1489 = vmatprep.mubr.msk.bf16.mxu1 (!%p166_p9), %vm1672_vm0, %v1671_v3  ;;  %v1673_v6 = vmov (!%p166_p9), 0   ;;  %s1675_s7 = smov (!%p166_p9), 126   ;;  %v1290_v48 = vld [vmem:[%s1978_s2] sm:$0xff] (!%p166_p9)  ;;  %vm231_vm1 = vcmask (!%p166_p9), 1041408   ;;  %vm224_vm2 = vcmask (!%p166_p9), 1039360  }
   0xf   : > { %v1759_v4 = vshrl.u32 (!%p166_p9), %v206_v0, 7  ;;  %273 = vmatprep.mubr.bf16.mxu0 (!%p166_p9), %v1673_v6  ;;  %1595 = vset.pattern.permute.xlu0 (!%p166_p9), %v1673_v6  ;;  %s1676_s8 = smov (!%p166_p9), 110   ;;  %s1677_s9 = smov (!%p166_p9), 109   ;;  %v1431_v53 = vld [vmem:[%s1977_s1 + $0x4] sm:$0xf] (!%p166_p9)  ;;  %vm227_vm3 = vcmask (!%p166_p9), 31744  }
  0x10   : > { %v205_v5 = vunpack.c.0.s8 (!%p166_p9), %v204_v2  ;;  %s1678_s10 = smov (!%p166_p9), 108   ;;  %s1679_s11 = smov (!%p166_p9), 92   ;;  %vm441_vm4 = vcmask (!%p166_p9), 1031168   ;;  %v198_v63 = vld [vmem:[%s1977_s1] sm:$0xf] (!%p166_p9)  ;;  %vm566_vm5 = vcmask (!%p166_p9), 900096  }
  0x11   : > { %s1680_s12 = smov (!%p166_p9), 91   ;;  %s1681_s13 = smov (!%p166_p9), 90   ;;  %vm691_vm6 = vcmask (!%p166_p9), 891904   ;;  %vm816_vm7 = vcmask (!%p166_p9), 883712   ;;  %vm941_vm8 = vcmask (!%p166_p9), 752640   ;;  %vm1066_vm9 = vcmask (!%p166_p9), 744448  }
  0x12   : > { %v1766_v7 = vsub.s32 (!%p166_p9), %v205_v5, %v1759_v4  ;;  %vm1191_vm10 = vcmask (!%p166_p9), 736256   ;;  %vm1320_vm11 = vcmask (!%p166_p9), 261120   ;;  %s1543_s30 = smul.u32 (!%p166_p9), 384, %s1729_s19 }
  0x15   : > { %s192_s27 = scalar_select %p191_p10, %s1729_s19, 1 }
  0x17   : > { %s1542_s28 = smul.u32 6, %s192_s27 }
  0x19   : > { %s1771_s5 = scalar_lea.vmem %s1976_s0, %s1542_s28  ;;  %s188_s28 = sand.u32 1, %s1660_s16  }
  0x1a   : > { %v197_v8 = vld [vmem:[%s1771_s5] sm:$0x3f]  ;;  %s1541_s29 = smul.u32 24, %s188_s28  ;;  %s1353_s19 = scalar_lea.sflag [#allocation3], %s188_s28 }
  0x1b   : > { %v1775_v9 = vrot.slane %v197_v8, %v1766_v7  ;;  %v202_v10 = vcombine.high %v197_v8, %v197_v8  ;;  %v415_v11 = vld [vmem:[%s1771_s5] sm:$0x3f] }
  0x1c   : > { %v426_v14 = vrot.slane %v415_v11, %v1766_v7  ;;  %v419_v15 = vcombine.high %v415_v11, %v415_v11  ;;  %v540_v17 = vld [vmem:[%s1771_s5] sm:$0x3f]  ;;  %v1438_v11 = vld [vmem:[%s1977_s1 + $0x8] sm:$0xf] }
  0x1d   : > { %218 = vrot.lane.b32.xlu0 %v1775_v9, %s1674_s6  ;;  %v1780_v12 = vrot.slane %v202_v10, %v1766_v7  ;;  %v1784_v13 = vcombine.high %v1775_v9, %v1775_v9  ;;  %v551_v19 = vrot.slane %v540_v17, %v1766_v7  ;;  %v544_v20 = vcombine.high %v540_v17, %v540_v17  ;;  %v665_v22 = vld [vmem:[%s1771_s5] sm:$0x3f] }
  0x1e   : > { %v434_v16 = vcombine.high %v426_v14, %v426_v14  ;;  %v433_v18 = vrot.slane %v419_v15, %v1766_v7  ;;  %v676_v24 = vrot.slane %v665_v22, %v1766_v7  ;;  %v669_v25 = vcombine.high %v665_v22, %v665_v22  ;;  %v790_v27 = vld [vmem:[%s1771_s5] sm:$0x3f] }
  0x1f   : > { %222 = vrot.lane.b32.xlu1 %v1780_v12, %s1674_s6  ;;  %v559_v21 = vcombine.high %v551_v19, %v551_v19  ;;  %v558_v23 = vrot.slane %v544_v20, %v1766_v7  ;;  %v801_v29 = vrot.slane %v790_v27, %v1766_v7  ;;  %v794_v30 = vcombine.high %v790_v27, %v790_v27  ;;  %v915_v32 = vld [vmem:[%s1771_s5] sm:$0x3f]  ;;  %v1442_v20 = vld [vmem:[%s1977_s1 + $0xc] sm:$0xf] }
  0x20   : > { %v684_v26 = vcombine.high %v676_v24, %v676_v24  ;;  %v683_v28 = vrot.slane %v669_v25, %v1766_v7  ;;  %v926_v34 = vrot.slane %v915_v32, %v1766_v7  ;;  %v919_v35 = vcombine.high %v915_v32, %v915_v32  ;;  %v1040_v37 = vld [vmem:[%s1771_s5] sm:$0x3f] }
  0x21   : > { %220 = vrot.lane.b32.xlu0 %v1784_v13, %s1674_s6  ;;  %v809_v31 = vcombine.high %v801_v29, %v801_v29  ;;  %v808_v33 = vrot.slane %v794_v30, %v1766_v7  ;;  %v1051_v39 = vrot.slane %v1040_v37, %v1766_v7  ;;  %v1044_v40 = vcombine.high %v1040_v37, %v1040_v37  ;;  %v1165_v42 = vld [vmem:[%s1771_s5] sm:$0x3f]  ;;  %s190_s5 = scalar_lea.vmem [#allocation2], %s1541_s29 }
  0x22   : > { %v934_v36 = vcombine.high %v926_v34, %v926_v34  ;;  %v933_v38 = vrot.slane %v919_v35, %v1766_v7  ;;  %v1176_v44 = vrot.slane %v1165_v42, %v1766_v7  ;;  %v1169_v45 = vcombine.high %v1165_v42, %v1165_v42  ;;  %s1367_s6 = sshll.u32 %s190_s5, 4  ;;  %s1935_s6 = int_to_ptr.vmem [resolvable:$true] %s1367_s6 }
  0x23   : > { %435 = vrot.lane.b32.xlu1 %v426_v14, %s1675_s7  ;;  %v1059_v41 = vcombine.high %v1051_v39, %v1051_v39  ;;  %v1058_v43 = vrot.slane %v1044_v40, %v1766_v7  ;;  %v332_v56 = vsel %vm231_vm1, %v1780_v12, 0  ;;  %v326_v59 = vsel %vm231_vm1, %v1775_v9, 0 }
  0x24   : > { %v1184_v46 = vcombine.high %v1176_v44, %v1176_v44  ;;  %v1183_v47 = vrot.slane %v1169_v45, %v1766_v7 }
  0x25   : > { %437 = vrot.lane.b32.xlu0 %v434_v16, %s1675_s7 }
  0x27   : > { %439 = vrot.lane.b32.xlu1 %v433_v18, %s1675_s7 }
  0x29   : > { %560 = vrot.lane.b32.xlu0 %v551_v19, %s1676_s8 }
  0x2b   : > { %562 = vrot.lane.b32.xlu1 %v559_v21, %s1676_s8 }
  0x2d   : > { %564 = vrot.lane.b32.xlu0 %v558_v23, %s1676_s8 }
  0x2f   : > { %685 = vrot.lane.b32.xlu1 %v676_v24, %s1677_s9 }
  0x31   : > { %687 = vrot.lane.b32.xlu0 %v684_v26, %s1677_s9 }
  0x33   : > { %689 = vrot.lane.b32.xlu1 %v683_v28, %s1677_s9  ;;  %v1446_v28 = vld [vmem:[%s1977_s1 + $0x10] sm:$0xf]  ;;  %s1933_s9 = scalar_lea.hbm %s1980_s4, %s1543_s30 }
  0x35   : > { %810 = vrot.lane.b32.xlu0 %v801_v29, %s1678_s10 }
  0x37   : > { %812 = vrot.lane.b32.xlu1 %v809_v31, %s1678_s10 }
  0x39   : > { %814 = vrot.lane.b32.xlu0 %v808_v33, %s1678_s10  ;;  %s1606_s10 = scalar_lea.vmem %s1935_s6, 384 }
  0x3a   : > { %p1607_p11 = scmp.ne.s32.totalorder %s1935_s6, %s1606_s10 }
  0x3b   : > { %935 = vrot.lane.b32.xlu1 %v926_v34, %s1679_s11 }
  0x3c   : > { %p1608_p12 = pnand %p1607_p11, %p1746_p5 }
  0x3d   : > { %937 = vrot.lane.b32.xlu0 %v934_v36, %s1679_s11  ;;  %v1450_v36 = vld [vmem:[%s1977_s1 + $0x14] sm:$0xf] }
  0x3e   : > { %p1609_p13 = pneg %p1608_p12 }
  0x3f   : > { %939 = vrot.lane.b32.xlu1 %v933_v38, %s1679_s11  ;;  %s1682_s11 = smov [#allocation2]  }
  0x41   : > { %1060 = vrot.lane.b32.xlu0 %v1051_v39, %s1680_s12 }
  0x43   : > { %1062 = vrot.lane.b32.xlu1 %v1059_v41, %s1680_s12 }
  0x45   : > { %1064 = vrot.lane.b32.xlu0 %v1058_v43, %s1680_s12  ;;  %v1454_v43 = vld [vmem:[%s1977_s1 + $0x18] sm:$0xf]  ;;  %s1610_s12 = sshll.u32 %s1682_s11, 4  ;;  %s1611_s12 = int_to_ptr.vmem [resolvable:$false] %s1610_s12 }
  0x46   : > { %p1613_p0 = scmp.lt.s32.totalorder %s1935_s6, %s1611_s12 }
  0x47   : > { %1185 = vrot.lane.b32.xlu1 %v1176_v44, %s1681_s13 }
  0x49   : > { %1187 = vrot.lane.b32.xlu0 %v1184_v46, %s1681_s13 }
  0x4b   : > { %1189 = vrot.lane.b32.xlu1 %v1183_v47, %s1681_s13  ;;  %s1612_s13 = scalar_lea.vmem %s1611_s12, 768 }
  0x4c   : > { %p1614_p1 = scmp.lt.s32.totalorder %s1612_s13, %s1606_s10 }
  0x4d   : > { %1293 = vperm.xlu0 %1595, %v1290_v48  }
  0x4e   : > { %p1615_p2 = por %p1614_p1, %p1613_p0 }
  0x50   : > { %p1616_p3 = pnand %p1615_p2, %p1609_p13 }
  0x8f   : > { %v219_v49 = vpop.permute.xlu0 %218 }
  0x91   : > { %v223_v50 = vpop.permute.xlu1 %222 }
  0x92   : > { %v239_v51 = vsel %vm231_vm1, %v223_v50, 0 }
  0x93   : > { %v221_v52 = vpop.permute.xlu0 %220  ;;  %1488 = vmatpush3.bf16.msra.mxu1 %v239_v51 }
  0x94   : > { %v226_v54 = vsel %vm224_vm2, %v221_v52, %v223_v50  ;;  %v225_v55 = vsel %vm224_vm2, %v219_v49, %v221_v52  ;;  %1493 = vmatprep.subr.bf16.mxu1 %v1671_v3  ;;  %v1458_v50 = vld [vmem:[%s1977_s1 + $0x1c] sm:$0xf] }
  0x95   : > { %1432 = vmatprep.subr.msk.bf16.mxu0 %vm231_vm1, %v226_v54  ;;  %v233_v57 = vsel %vm231_vm1, %v225_v55, 0  ;;  %v436_v58 = vpop.permute.xlu1 %435  ;;  %v1462_v54 = vld [vmem:[%s1977_s1 + $0x20] sm:$0xf] }
  0x96   : > { %242 = vmatpush1.bf16.msra.mxu0 %v233_v57  ;;  %1490 = vmatmul.mubr.msk.bf16.vlgmr.msra.gmra.mrb[0].mxu1 %vm227_vm3, %v1431_v53 }
  0x97   : > { %1435 = vmatprep.subr.msk.bf16.mxu0 %vm231_vm1, %v1784_v13  ;;  %v438_v60 = vpop.permute.xlu0 %437  ;;  %1494 = vmatpush3.bf16.msra.mxu1 %v332_v56 }
  0x98   : > { %1495 = vmatprep.mubr.msk.bf16.mxu1 %vm1672_vm0, %v1671_v3  ;;  %1499 = vmatprep.subr.bf16.mxu1 %v1671_v3  ;;  %v442_v1 = vsel %vm441_vm4, %v436_v58, %v438_v60 }
  0x99   : > { %1433 = vmatmul.mubr.msk.bf16.vlgmr.msra.gmra.mrb[0].mxu0 %vm227_vm3, %v1431_v53  ;;  %v440_v61 = vpop.permute.xlu1 %439  ;;  %v448_v7 = vsel %vm231_vm1, %v442_v1, 0 }
  0x9a   : > { %335 = vmatpush1.bf16.msra.mxu0 %v326_v59  ;;  %v443_v62 = vsel %vm441_vm4, %v438_v60, %v440_v61  ;;  %366 = vmatprep.mubr.bf16.mxu0 %v1673_v6  ;;  %v454_v2 = vsel %vm231_vm1, %v440_v61, 0 }
  0x9b   : > { %1439 = vmatprep.subr.msk.bf16.mxu0 %vm231_vm1, %v443_v62  ;;  %v561_v0 = vpop.permute.xlu0 %560 }
  0x9d   : > { %v563_v5 = vpop.permute.xlu1 %562 }
  0x9e   : > { %1496 = vmatmul.mubr.msk.bf16.vlgmr.msra.gmra.mrb[4].mxu1 %vm227_vm3, %v198_v63  ;;  %v567_v13 = vsel %vm566_vm5, %v561_v0, %v563_v5 }
  0x9f   : > { %1500 = vmatpush3.bf16.msra.mxu1 %v454_v2  ;;  %1501 = vmatprep.mubr.msk.bf16.mxu1 %vm1672_vm0, %v1671_v3  ;;  %v565_v8 = vpop.permute.xlu0 %564  ;;  %v573_v16 = vsel %vm231_vm1, %v567_v13, 0 }
  0xa0   : > { %v568_v9 = vsel %vm566_vm5, %v563_v5, %v565_v8  ;;  %1505 = vmatprep.subr.bf16.mxu1 %v1671_v3  ;;  %v579_v14 = vsel %vm231_vm1, %v565_v8, 0 }
  0xa1   : > { %1436 = vmatmul.mubr.msk.bf16.vlgmr.msra.gmra.mrb[4].mxu0 %vm227_vm3, %v198_v63  ;;  %v686_v10 = vpop.permute.xlu1 %685 }
  0xa2   : > { %457 = vmatpush1.bf16.msra.mxu0 %v448_v7  ;;  %488 = vmatprep.mubr.bf16.mxu0 %v1673_v6 }
  0xa3   : > { %1443 = vmatprep.subr.msk.bf16.mxu0 %vm231_vm1, %v568_v9  ;;  %v688_v12 = vpop.permute.xlu0 %687 }
  0xa4   : > { %v692_v21 = vsel %vm691_vm6, %v686_v10, %v688_v12 }
  0xa5   : > { %v690_v15 = vpop.permute.xlu1 %689  ;;  %v698_v24 = vsel %vm231_vm1, %v692_v21, 0 }
  0xa6   : > { %1502 = vmatmul.mubr.msk.bf16.vlgmr.msra.gmra.mrb[8].mxu1 %vm227_vm3, %v1438_v11  ;;  %v693_v18 = vsel %vm691_vm6, %v688_v12, %v690_v15  ;;  %v704_v22 = vsel %vm231_vm1, %v690_v15, 0 }
  0xa7   : > { %1506 = vmatpush3.bf16.msra.mxu1 %v579_v14  ;;  %1507 = vmatprep.mubr.msk.bf16.mxu1 %vm1672_vm0, %v1671_v3  ;;  %v811_v17 = vpop.permute.xlu0 %810 }
  0xa8   : > { %1511 = vmatprep.subr.bf16.mxu1 %v1671_v3 }
  0xa9   : > { %1440 = vmatmul.mubr.msk.bf16.vlgmr.msra.gmra.mrb[8].mxu0 %vm227_vm3, %v1438_v11  ;;  %v813_v19 = vpop.permute.xlu1 %812 }
  0xaa   : > { %582 = vmatpush1.bf16.msra.mxu0 %v573_v16  ;;  %613 = vmatprep.mubr.bf16.mxu0 %v1673_v6  ;;  %v817_v29 = vsel %vm816_vm7, %v811_v17, %v813_v19 }
  0xab   : > { %1447 = vmatprep.subr.msk.bf16.mxu0 %vm231_vm1, %v693_v18  ;;  %v815_v23 = vpop.permute.xlu0 %814  ;;  %v823_v32 = vsel %vm231_vm1, %v817_v29, 0 }
  0xac   : > { %v818_v26 = vsel %vm816_vm7, %v813_v19, %v815_v23  ;;  %v829_v30 = vsel %vm231_vm1, %v815_v23, 0 }
  0xad   : > { %v936_v25 = vpop.permute.xlu1 %935 }
  0xae   : > { %1508 = vmatmul.mubr.msk.bf16.vlgmr.msra.gmra.mrb[12].mxu1 %vm227_vm3, %v1442_v20 }
  0xaf   : > { %1512 = vmatpush3.bf16.msra.mxu1 %v704_v22  ;;  %1513 = vmatprep.mubr.msk.bf16.mxu1 %vm1672_vm0, %v1671_v3  ;;  %v938_v27 = vpop.permute.xlu0 %937 }
  0xb0   : > { %1517 = vmatprep.subr.bf16.mxu1 %v1671_v3  ;;  %v942_v37 = vsel %vm941_vm8, %v936_v25, %v938_v27 }
  0xb1   : > { %1444 = vmatmul.mubr.msk.bf16.vlgmr.msra.gmra.mrb[12].mxu0 %vm227_vm3, %v1442_v20  ;;  %v940_v31 = vpop.permute.xlu1 %939  ;;  %v948_v40 = vsel %vm231_vm1, %v942_v37, 0 }
  0xb2   : > { %707 = vmatpush1.bf16.msra.mxu0 %v698_v24  ;;  %738 = vmatprep.mubr.bf16.mxu0 %v1673_v6  ;;  %v943_v34 = vsel %vm941_vm8, %v938_v27, %v940_v31  ;;  %v954_v38 = vsel %vm231_vm1, %v940_v31, 0 }
  0xb3   : > { %1451 = vmatprep.subr.msk.bf16.mxu0 %vm231_vm1, %v818_v26  ;;  %v1061_v33 = vpop.permute.xlu0 %1060 }
  0xb5   : > { %v1063_v35 = vpop.permute.xlu1 %1062 }
  0xb6   : > { %1514 = vmatmul.mubr.msk.bf16.vlgmr.msra.gmra.mrb[16].mxu1 %vm227_vm3, %v1446_v28  ;;  %v1067_v44 = vsel %vm1066_vm9, %v1061_v33, %v1063_v35 }
  0xb7   : > { %1518 = vmatpush3.bf16.msra.mxu1 %v829_v30  ;;  %1519 = vmatprep.mubr.msk.bf16.mxu1 %vm1672_vm0, %v1671_v3  ;;  %v1065_v39 = vpop.permute.xlu0 %1064  ;;  %v1073_v48 = vsel %vm231_vm1, %v1067_v44, 0 }
  0xb8   : > { %1523 = vmatprep.subr.bf16.mxu1 %v1671_v3  ;;  %v1068_v42 = vsel %vm1066_vm9, %v1063_v35, %v1065_v39  ;;  %v1079_v45 = vsel %vm231_vm1, %v1065_v39, 0 }
  0xb9   : > { %1448 = vmatmul.mubr.msk.bf16.vlgmr.msra.gmra.mrb[16].mxu0 %vm227_vm3, %v1446_v28  ;;  %v1186_v41 = vpop.permute.xlu1 %1185 }
  0xba   : > { %832 = vmatpush1.bf16.msra.mxu0 %v823_v32  ;;  %863 = vmatprep.mubr.bf16.mxu0 %v1673_v6 }
  0xbb   : > { %1455 = vmatprep.subr.msk.bf16.mxu0 %vm231_vm1, %v943_v34  ;;  %v1188_v46 = vpop.permute.xlu0 %1187 }
  0xbc   : > { %v1192_v51 = vsel %vm1191_vm10, %v1186_v41, %v1188_v46 }
  0xbd   : > { %v1190_v47 = vpop.permute.xlu1 %1189  ;;  %v1198_v53 = vsel %vm231_vm1, %v1192_v51, 0 }
  0xbe   : > { %1520 = vmatmul.mubr.msk.bf16.vlgmr.msra.gmra.mrb[20].mxu1 %vm227_vm3, %v1450_v36  ;;  %v1193_v49 = vsel %vm1191_vm10, %v1188_v46, %v1190_v47  ;;  %v1204_v52 = vsel %vm231_vm1, %v1190_v47, 0 }
  0xbf   : > { %1524 = vmatpush3.bf16.msra.mxu1 %v954_v38  ;;  %1525 = vmatprep.mubr.msk.bf16.mxu1 %vm1672_vm0, %v1671_v3 }
  0xc0   : > { %1529 = vmatprep.subr.bf16.mxu1 %v1671_v3 }
  0xc1   : > { %1452 = vmatmul.mubr.msk.bf16.vlgmr.msra.gmra.mrb[20].mxu0 %vm227_vm3, %v1450_v36 }
  0xc2   : > { %957 = vmatpush1.bf16.msra.mxu0 %v948_v40  ;;  %988 = vmatprep.mubr.bf16.mxu0 %v1673_v6 }
  0xc3   : > { %1459 = vmatprep.subr.msk.bf16.mxu0 %vm231_vm1, %v1068_v42 }
  0xc6   : > { %1526 = vmatmul.mubr.msk.bf16.vlgmr.msra.gmra.mrb[24].mxu1 %vm227_vm3, %v1454_v43 }
  0xc7   : > { %1530 = vmatpush3.bf16.msra.mxu1 %v1079_v45  ;;  %1531 = vmatprep.mubr.msk.bf16.mxu1 %vm1672_vm0, %v1671_v3 }
  0xc8   : > { %1535 = vmatprep.subr.bf16.mxu1 %v1671_v3 }
  0xc9   : > { %1456 = vmatmul.mubr.msk.bf16.vlgmr.msra.gmra.mrb[24].mxu0 %vm227_vm3, %v1454_v43 }
  0xca   : > { %1082 = vmatpush1.bf16.msra.mxu0 %v1073_v48  ;;  %1113 = vmatprep.mubr.bf16.mxu0 %v1673_v6 }
  0xcb   : > { %1463 = vmatprep.subr.msk.bf16.mxu0 %vm231_vm1, %v1193_v49 }
  0xce   : > { %1532 = vmatmul.mubr.msk.bf16.vlgmr.msra.gmra.mrb[28].mxu1 %vm227_vm3, %v1458_v50 }
  0xcf   : > { %1536 = vmatpush3.bf16.msra.mxu1 %v1204_v52  ;;  %1537 = vmatprep.mubr.msk.bf16.mxu1 %vm1672_vm0, %v1671_v3 }
  0xd1   : > { %1460 = vmatmul.mubr.msk.bf16.vlgmr.msra.gmra.mrb[28].mxu0 %vm227_vm3, %v1458_v50 }
  0xd2   : > { %1207 = vmatpush1.bf16.msra.mxu0 %v1198_v53  ;;  %1238 = vmatprep.mubr.bf16.mxu0 %v1673_v6 }
  0xd6   : > { %1538 = vmatmul.mubr.msk.bf16.vlgmr.msra.gmra.mrb[32].mxu1 %vm227_vm3, %v1462_v54 }
  0xd9   : > { %1464 = vmatmul.mubr.msk.bf16.vlgmr.msra.gmra.mrb[32].mxu0 %vm227_vm3, %v1462_v54 }
 0x169   : > { %v316_v55 = vpop.f32.mrb[0].mxu1 }
 0x16a   : > { %v1491_v56 = vpop.f32.mrb[1].mxu1 }
 0x16b   : > { %v319_v57 = vpop.f32.mrb[2].mxu1 }
 0x16c   : > { %v275_v58 = vpop.f32.mrb[0].mxu0  ;;  %v1492_v59 = vpop.f32.mrb[3].mxu1 }
 0x16d   : > { %v277_v60 = vpop.f32.mrb[1].mxu0 }
 0x16e   : > { %v279_v3 = vpop.f32.mrb[2].mxu0 }
 0x16f   : > { %v280_v61 = vpop.f32.mrb[3].mxu0 }
 0x171   : > { %v409_v62 = vpop.f32.mrb[4].mxu1 }
 0x172   : > { %v410_v63 = vadd.f32 %v409_v62, %v316_v55  ;;  %v1497_v0 = vpop.f32.mrb[5].mxu1 }
 0x173   : > { %v412_v6 = vpop.f32.mrb[6].mxu1 }
 0x174   : > { %v368_v1 = vpop.f32.mrb[4].mxu0  ;;  %v1498_v2 = vpop.f32.mrb[7].mxu1 }
 0x175   : > { %v369_v5 = vadd.f32 %v368_v1, %v275_v58  ;;  %v370_v7 = vpop.f32.mrb[5].mxu0 }
 0x176   : > { %v371_v8 = vadd.f32 %v370_v7, %v277_v60  ;;  %v372_v9 = vpop.f32.mrb[6].mxu0 }
 0x177   : > { %v373_v10 = vpop.f32.mrb[7].mxu0 }
 0x179   : > { %v531_v11 = vpop.f32.mrb[8].mxu1 }
 0x17a   : > { %v539_v12 = vadd.f32 %v531_v11, %v410_v63  ;;  %v1503_v13 = vpop.f32.mrb[9].mxu1 }
 0x17b   : > { %v534_v14 = vpop.f32.mrb[10].mxu1 }
 0x17c   : > { %v490_v15 = vpop.f32.mrb[8].mxu0  ;;  %v1504_v16 = vpop.f32.mrb[11].mxu1 }
 0x17d   : > { %v537_v17 = vadd.f32 %v490_v15, %v369_v5  ;;  %v492_v18 = vpop.f32.mrb[9].mxu0  ;;  %v1303_v15 = vsub.s32 0, %v1759_v4  ;;  %v1311_v16 = vsub.s32 2, %v1759_v4 }
 0x17e   : > { %v538_v19 = vadd.f32 %v492_v18, %v371_v8  ;;  %v494_v20 = vpop.f32.mrb[10].mxu0  ;;  %v1294_v18 = vpop.permute.xlu0 %1293 }
 0x17f   : > { %v495_v21 = vpop.f32.mrb[11].mxu0  ;;  %v1307_v20 = vsub.s32 1, %v1759_v4 }
 0x181   : > { %v656_v22 = vpop.f32.mrb[12].mxu1 }
 0x182   : > { %v664_v23 = vadd.f32 %v656_v22, %v539_v12  ;;  %v1509_v24 = vpop.f32.mrb[13].mxu1 }
 0x183   : > { %v659_v25 = vpop.f32.mrb[14].mxu1 }
 0x184   : > { %v615_v26 = vpop.f32.mrb[12].mxu0  ;;  %v1510_v27 = vpop.f32.mrb[15].mxu1 }
 0x185   : > { %v662_v28 = vadd.f32 %v615_v26, %v537_v17  ;;  %v617_v29 = vpop.f32.mrb[13].mxu0 }
 0x186   : > { %v663_v30 = vadd.f32 %v617_v29, %v538_v19  ;;  %v619_v31 = vpop.f32.mrb[14].mxu0  ;;  %v1299_v19 = vld [vmem:[%s1979_s3] sm:$0x7] }
 0x187   : > { %v620_v32 = vpop.f32.mrb[15].mxu0  ;;  %v1304_v27 = vrot.slane %v1299_v19, %v1303_v15  ;;  %v1312_v29 = vrot.slane %v1299_v19, %v1311_v16  ;;  %v1308_v31 = vrot.slane %v1299_v19, %v1307_v20 }
 0x189   : > { %v781_v33 = vpop.f32.mrb[16].mxu1 }
 0x18a   : > { %v789_v34 = vadd.f32 %v781_v33, %v664_v23  ;;  %v1515_v35 = vpop.f32.mrb[17].mxu1 }
 0x18b   : > { %v784_v36 = vpop.f32.mrb[18].mxu1 }
 0x18c   : > { %v740_v37 = vpop.f32.mrb[16].mxu0  ;;  %v1516_v38 = vpop.f32.mrb[19].mxu1 }
 0x18d   : > { %v787_v39 = vadd.f32 %v740_v37, %v662_v28  ;;  %v742_v40 = vpop.f32.mrb[17].mxu0 }
 0x18e   : > { %v788_v41 = vadd.f32 %v742_v40, %v663_v30  ;;  %v744_v42 = vpop.f32.mrb[18].mxu0 }
 0x18f   : > { %v745_v43 = vpop.f32.mrb[19].mxu0 }
 0x191   : > { %v906_v44 = vpop.f32.mrb[20].mxu1 }
 0x192   : > { %v914_v45 = vadd.f32 %v906_v44, %v789_v34  ;;  %v1521_v46 = vpop.f32.mrb[21].mxu1 }
 0x193   : > { %v909_v47 = vpop.f32.mrb[22].mxu1 }
 0x194   : > { %v865_v48 = vpop.f32.mrb[20].mxu0  ;;  %v1522_v49 = vpop.f32.mrb[23].mxu1 }
 0x195   : > { %v912_v50 = vadd.f32 %v865_v48, %v787_v39  ;;  %v867_v51 = vpop.f32.mrb[21].mxu0 }
 0x196   : > { %v913_v52 = vadd.f32 %v867_v51, %v788_v41  ;;  %v869_v53 = vpop.f32.mrb[22].mxu0 }
 0x197   : > { %v870_v54 = vpop.f32.mrb[23].mxu0 }
 0x199   : > { %v1031_v55 = vpop.f32.mrb[24].mxu1 }
 0x19a   : > { %v1039_v56 = vadd.f32 %v1031_v55, %v914_v45  ;;  %v1527_v57 = vpop.f32.mrb[25].mxu1 }
 0x19b   : > { %v1034_v58 = vpop.f32.mrb[26].mxu1 }
 0x19c   : > { %v990_v59 = vpop.f32.mrb[24].mxu0  ;;  %v1528_v60 = vpop.f32.mrb[27].mxu1 }
 0x19d   : > { %v1037_v3 = vadd.f32 %v990_v59, %v912_v50  ;;  %v992_v61 = vpop.f32.mrb[25].mxu0 }
 0x19e   : > { %v1038_v62 = vadd.f32 %v992_v61, %v913_v52  ;;  %v994_v63 = vpop.f32.mrb[26].mxu0 }
 0x19f   : > { %v995_v0 = vpop.f32.mrb[27].mxu0 }
 0x1a1   : > { %v1156_v6 = vpop.f32.mrb[28].mxu1 }
 0x1a2   : > { %v1164_v1 = vadd.f32 %v1156_v6, %v1039_v56  ;;  %v1533_v2 = vpop.f32.mrb[29].mxu1 }
 0x1a3   : > { %v1159_v5 = vpop.f32.mrb[30].mxu1 }
 0x1a4   : > { %v1115_v7 = vpop.f32.mrb[28].mxu0  ;;  %v1534_v8 = vpop.f32.mrb[31].mxu1 }
 0x1a5   : > { %v1162_v9 = vadd.f32 %v1115_v7, %v1037_v3  ;;  %v1117_v10 = vpop.f32.mrb[29].mxu0 }
 0x1a6   : > { %v1163_v11 = vadd.f32 %v1117_v10, %v1038_v62  ;;  %v1119_v12 = vpop.f32.mrb[30].mxu0 }
 0x1a7   : > { %v1120_v13 = vpop.f32.mrb[31].mxu0 }
 0x1a9   : > { %v1281_v14 = vpop.f32.mrb[32].mxu1 }
 0x1aa   : > { %v1289_v17 = vadd.f32 %v1281_v14, %v1164_v1  ;;  %v1539_v21 = vpop.f32.mrb[33].mxu1 }
 0x1ab   : > { %v1284_v22 = vpop.f32.mrb[34].mxu1 }
 0x1ac   : > { %v1240_v23 = vpop.f32.mrb[32].mxu0  ;;  %v1540_v24 = vpop.f32.mrb[35].mxu1  ;;  %v1298_v25 = vadd.f32 %v1294_v18, %v1289_v17 }
 0x1ad   : > { %v1287_v26 = vadd.f32 %v1240_v23, %v1162_v9  ;;  %v1242_v28 = vpop.f32.mrb[33].mxu0 }
 0x1ae   : > { %v1288_v30 = vadd.f32 %v1242_v28, %v1163_v11  ;;  %v1244_v32 = vpop.f32.mrb[34].mxu0  ;;  %v1318_v37 = vmul.f32 %v1312_v29, %v1298_v25 }
 0x1af   : > { %v1296_v33 = vadd.f32 %v1294_v18, %v1287_v26  ;;  %v1245_v34 = vpop.f32.mrb[35].mxu0 }
 0x1b0   : > { %v1297_v35 = vadd.f32 %v1294_v18, %v1288_v30  ;;  %v1321_v39 = vsel %vm1320_vm11, %v1318_v37, 0.0 }
 0x1b1   : > { %v1316_v36 = vmul.f32 %v1304_v27, %v1296_v33 }
 0x1b2   : > { %v1317_v38 = vmul.f32 %v1308_v31, %v1297_v35 }
 0x1b4   : > { %v1319_v4 = vadd.f32 %v1317_v38, %v1316_v36 }
 0x1b6   : > { %v1322_v40 = vadd.f32 %v1321_v39, %v1319_v4 }
 0x1b8   : > { %1323 = vadd.xlane.f32.xlu1 %v1322_v40 }
 0x245   : > { %v1324_v41 = vpop.xlane.xlu1 %1323 }
 0x246   : > { %v1325_v42 = vmul.f32 0.00390625, %v1324_v41 }
 0x248   : > { %v1326_v43 = vsub.f32 %v1296_v33, %v1325_v42  ;;  %v1327_v44 = vsub.f32 %v1297_v35, %v1325_v42  ;;  %v1328_v45 = vsub.f32 %v1298_v25, %v1325_v42 }
 0x24a   : > { %v1329_v46 = vmul.f32 %v1326_v43, %v1326_v43  ;;  %v1330_v47 = vmul.f32 %v1327_v44, %v1327_v44  ;;  %v1331_v48 = vmul.f32 %v1328_v45, %v1328_v45 }
 0x24c   : > { %v1332_v49 = vmul.f32 %v1329_v46, %v1304_v27  ;;  %v1333_v50 = vmul.f32 %v1330_v47, %v1308_v31  ;;  %v1334_v51 = vmul.f32 %v1331_v48, %v1312_v29 }
 0x24e   : > { %v1335_v52 = vadd.f32 %v1333_v50, %v1332_v49  ;;  %v1336_v53 = vsel %vm1320_vm11, %v1334_v51, 0.0 }
 0x250   : > { %v1337_v54 = vadd.f32 %v1336_v53, %v1335_v52 }
 0x252   : > { %1338 = vadd.xlane.f32.xlu0 %v1337_v54 }
 0x2df   : > { %v1339_v55 = vpop.xlane.xlu0 %1338 }
 0x2e0   : > { %v1340_v56 = vmul.f32 0.00390625, %v1339_v55 }
 0x2e2   : > { %v1341_v57 = vadd.f32 1e-05, %v1340_v56 }
 0x2e4   : > { %1604 = vrsqrt.f32 %v1341_v57 }
 0x2ee   : > { %v1605_v58 = vpop.eup %1604 }
 0x2ef   : > { %v1343_v59 = vmul.f32 %v1605_v58, %v1326_v43  ;;  %v1344_v60 = vmul.f32 %v1605_v58, %v1327_v44  ;;  %v1345_v3 = vmul.f32 %v1605_v58, %v1328_v45 }
 0x2f1   : > { %v1346_v61 = vmax.f32 %v1343_v59, 0.0  ;;  %v1347_v62 = vmax.f32 %v1344_v60, 0.0  ;;  %v1348_v63 = vmax.f32 %v1345_v3, 0.0 }
 0x2f3   : > { %1349 = vst [vmem:[%s190_s5] sm:$0xff] %v1346_v61  ;;  %1350 = vst [vmem:[%s190_s5 + $0x8] sm:$0xff] %v1347_v62 }
 0x2f4   : > { %1351 = vst.msk [vmem:[%s190_s5 + $0x10] sm:$0xff] %vm1320_vm11, %v1348_v63 }
 0x2f5   : > { %1619 = shalt.err (!%p1616_p3)
}
 0x2f6   : > { %s1620_s14 = scalar_lea.hbm %s1933_s9, 384  ;;  %s1624_s23 = scalar_lea.hbm %s1980_s4, 768 }
 0x2f7   : > { %p1621_p4 = scmp.ne.s32.totalorder %s1933_s9, %s1620_s14  ;;  %p1625_p9 = scmp.lt.u32.totalorder %s1933_s9, %s1980_s4 }
 0x2f8   : > { %p1626_p10 = scmp.lt.u32.totalorder %s1624_s23, %s1620_s14  ;;  %p1628_p12 = scmp.lt.u32.totalorder %s1620_s14, %s1933_s9 }
 0x2f9   : > { %p1622_p7 = pnand %p1621_p4, %p1746_p5 }
 0x2fa   : > { %p1627_p11 = por %p1626_p10, %p1625_p9 }
 0x2fb   : > { %p1623_p8 = pneg %p1622_p7 }
 0x2fc   : > { %p1629_p13 = por %p1628_p12, %p1627_p11 }
 0x2fe   : > { %p1630_p0 = pnand %p1629_p13, %p1623_p8 }
 0x300   : > { %1633 = shalt.err (!%p1630_p0)
}
 0x301   : > { %1544 = dma.vmem_to_hbm [thread:$0]  (%p1746_p5), %s1935_s6, 384, %s1933_s9, %s1353_s19  }
 0x302 PF: > { %p1550_p1 = scmp.ge.s32.totalorder %s1668_s18, 2  ;;  %s1379_s29 = sand.u32 1, %s1656_s15  }
 0x303   : > { %s1380_s30 = scalar_lea.sflag [#allocation3], %s1379_s29 }
 0x304   : > { %p1547_p2 = pnand %p1550_p1, %p1750_p6 }
 0x306   : > { %1651 = dma.done.wait (!%p1547_p2), %s1380_s30, 384  }
 0x307   : > { %1653 = vsyncadd (!%p1547_p2), %s1380_s30, 4294966912  ;;  %p14_p3 = scmp.ge.s32.totalorder %s1733_s21, 4   ;;  %s1983_s15 = smov %s1660_s16 }
 0x308   : > { %s1984_s16 = smov %s1664_s17  ;;  %s1985_s17 = smov %s1744_s24 }
 0x309   : > { %s1986_s18 = smov %s1733_s21  ;;  %16 = sbr.rel (!%p14_p3) target bundleno = 3 (0x3), region = 79 }
 0x310   :  { %1385 = vsyncpa [#allocation3], 1 }
 0x311   :  { %1387 = vsyncpa [#allocation3 + $0x1], 1 }

</bundles_post_ra>
